<compile_context>
chip_gen: v7x
topology: tpu7x:2x2x1
jax: 0.10.0
libtpu: 0.0.40
codegen_flags: <defaults>
</compile_context>

<pallas_src>
import functools
import math

import jax
import jax.numpy as jnp
from jax.experimental import pallas as pl
from jax.experimental.pallas import tpu as pltpu


def _tcn_block_kernel(x_ref, w1_ref, b1_ref, w2_ref, b2_ref, *rest,
                      T, K, dil, relu2, has_conv3):
    if has_conv3:
        w3_ref, b3_ref, o_ref = rest
    else:
        (o_ref,) = rest

    Mb = x_ref.shape[1]              # lanes: (padded) B*T rows of this block
    x = x_ref[...]                   # (C_in, Mb) f32

    # In-batch time index along the lane axis.  Blocks are batch-aligned
    # (block size is a multiple of T when grid > 1), so no grid offset needed.
    it = jax.lax.broadcasted_iota(jnp.int32, (1, Mb), 1)
    if (T & (T - 1)) == 0:           # power-of-two T: avoid the integer modulo
        t_local = it & (T - 1)
    else:
        t_local = it % T

    def causal_shift(v, s):
        # v[:, m] <- v[:, m - s]; rows whose in-batch time < s read the implicit
        # zero left-padding (mask also kills roll wrap-around / cross-batch rows).
        vr = pltpu.roll(v, shift=s, axis=1)          # XLU lane rotate (free slot)
        return jnp.where(t_local >= s, vr, 0.0)

    F_ = w1_ref.shape[1]
    C_out = w2_ref.shape[1]

    # ---- conv1: K dilated taps accumulated as MXU matmuls (bf16 in, f32 acc) ----
    h = jnp.zeros((F_, Mb), jnp.float32)
    for k in range(K):
        s = (K - 1 - k) * dil
        if s >= T:
            continue                                  # tap sees only left padding
        xk = x if s == 0 else causal_shift(x, s)
        h = h + jnp.dot(w1_ref[k], xk.astype(jnp.bfloat16),
                        preferred_element_type=jnp.float32)
    h = jnp.maximum(h + b1_ref[...], 0.0)             # (F, Mb) f32
    # TODO(synk): dropout_fn treated as identity (eval mode).

    # ---- conv2: same structure over the ReLU'd hidden activations ----
    y = jnp.zeros((C_out, Mb), jnp.float32)
    for k in range(K):
        s = (K - 1 - k) * dil
        if s >= T:
            continue
        hk = h if s == 0 else causal_shift(h, s)
        y = y + jnp.dot(w2_ref[k], hk.astype(jnp.bfloat16),
                        preferred_element_type=jnp.float32)
    y = y + b2_ref[...]
    if relu2:                        # only when nr_blocks_below < num_layers - 1
        y = jnp.maximum(y, 0.0)

    # ---- residual (optionally through the 1x1 conv); no extra input needed ----
    if has_conv3:
        res = jnp.dot(w3_ref[...], x.astype(jnp.bfloat16),
                      preferred_element_type=jnp.float32) + b3_ref[...]
    else:
        res = x                      # exact f32 skip add when channels match

    o_ref[...] = (y + res).astype(o_ref.dtype)


def tcn_residual_block2(x, params, *, kernel_size, dilation_base,
                        nr_blocks_below, num_layers):
    """x: (B, C_in, T) in PyTorch Conv1d layout. Returns (B, C_out, T)."""
    B, C_in, T = x.shape
    K = kernel_size
    dil = dilation_base ** nr_blocks_below

    w1 = params["w1"]                # (F, C_in, K)   torch weight layout
    b1 = params["b1"]                # (F,)
    w2 = params["w2"]                # (C_out, F, K)
    b2 = params["b2"]                # (C_out,)
    F_ = w1.shape[0]
    C_out = w2.shape[0]
    has_conv3 = (C_in != C_out)
    relu2 = nr_blocks_below < num_layers - 1

    # --- channels-on-sublanes / time-on-lanes layout; x enters HBM exactly once ---
    BT = B * T
    LANE = 128
    Mp = ((BT + LANE - 1) // LANE) * LANE            # lane-dense padded row count
    x_cm = jnp.transpose(x, (1, 0, 2)).reshape(C_in, BT).astype(jnp.float32)
    if Mp != BT:
        x_cm = jnp.pad(x_cm, ((0, 0), (0, Mp - BT)))

    # Lane-block selection: multiple of lcm(T, 128) so blocks stay batch-aligned
    # (required for in-kernel roll), capped for VMEM; single block when small.
    # Multiple blocks also let v7x's two TensorCores split the grid ("parallel").
    align = T * LANE // math.gcd(T, LANE)
    MAX_LANES = 4096
    if Mp <= MAX_LANES or Mp % align != 0:
        M_blk = Mp
    else:
        M_blk = align
        for mult in range(MAX_LANES // align, 0, -1):
            if Mp % (mult * align) == 0:
                M_blk = mult * align
                break
    grid = (Mp // M_blk,)

    # Weights as per-tap (C_out_like, C_in_like) matrices, bf16 MXU operands;
    # biases stay f32 for the pointwise epilogue.
    w1_t = jnp.transpose(w1, (2, 0, 1)).astype(jnp.bfloat16)   # (K, F, C_in)
    w2_t = jnp.transpose(w2, (2, 0, 1)).astype(jnp.bfloat16)   # (K, C_out, F)
    b1_c = b1.reshape(F_, 1).astype(jnp.float32)
    b2_c = b2.reshape(C_out, 1).astype(jnp.float32)

    in_arrays = [x_cm, w1_t, b1_c, w2_t, b2_c]
    in_specs = [
        pl.BlockSpec((C_in, M_blk), lambda i: (0, i)),
        pl.BlockSpec((K, F_, C_in), lambda i: (0, 0, 0)),
        pl.BlockSpec((F_, 1), lambda i: (0, 0)),
        pl.BlockSpec((K, C_out, F_), lambda i: (0, 0, 0)),
        pl.BlockSpec((C_out, 1), lambda i: (0, 0)),
    ]
    if has_conv3:
        w3_t = params["w3"][:, :, 0].astype(jnp.bfloat16)       # (C_out, C_in)
        b3_c = params["b3"].reshape(C_out, 1).astype(jnp.float32)
        in_arrays += [w3_t, b3_c]
        in_specs += [
            pl.BlockSpec((C_out, C_in), lambda i: (0, 0)),
            pl.BlockSpec((C_out, 1), lambda i: (0, 0)),
        ]

    kernel = functools.partial(_tcn_block_kernel, T=T, K=K, dil=dil,
                               relu2=relu2, has_conv3=has_conv3)

    flops = 2 * BT * (K * C_in * F_ + K * F_ * C_out)
    if has_conv3:
        flops += 2 * BT * C_in * C_out
    bytes_accessed = sum(int(a.size) * a.dtype.itemsize for a in in_arrays) \
        + Mp * C_out * 4

    out2d = pl.pallas_call(
        kernel,
        out_shape=jax.ShapeDtypeStruct((C_out, Mp), jnp.float32),
        grid=grid,
        in_specs=in_specs,
        out_specs=pl.BlockSpec((C_out, M_blk), lambda i: (0, i)),
        compiler_params=pltpu.CompilerParams(
            dimension_semantics=("parallel",)),
        cost_estimate=pl.CostEstimate(
            flops=int(flops), transcendentals=0,
            bytes_accessed=int(bytes_accessed)),
    )(*in_arrays)

    out2d = out2d[:, :BT].reshape(C_out, B, T)
    return jnp.transpose(out2d, (1, 0, 2))


# ---------------- pure-JAX f32 reference (for verification only) ----------------
def _ref_conv1d(xp, w, b, dil):
    # xp: (B, C, Tp) already padded; w: (O, C, K)
    K = w.shape[2]
    T = xp.shape[2] - dil * (K - 1)
    out = jnp.zeros((xp.shape[0], w.shape[0], T), jnp.float32)
    for k in range(K):
        out = out + jnp.einsum('bct,oc->bot', xp[:, :, k * dil:k * dil + T],
                               w[:, :, k])
    return out + b[None, :, None]


def ref_forward(x, params, *, kernel_size, dilation_base, nr_blocks_below,
                num_layers):
    K = kernel_size
    dil = dilation_base ** nr_blocks_below
    pad = dil * (K - 1)
    C_in = x.shape[1]
    C_out = params["w2"].shape[0]
    xp = jnp.pad(x, ((0, 0), (0, 0), (pad, 0)))
    h = jax.nn.relu(_ref_conv1d(xp, params["w1"], params["b1"], dil))
    hp = jnp.pad(h, ((0, 0), (0, 0), (pad, 0)))
    y = _ref_conv1d(hp, params["w2"], params["b2"], dil)
    if nr_blocks_below < num_layers - 1:
        y = jax.nn.relu(y)
    res = x
    if C_in != C_out:
        res = jnp.einsum('bct,oc->bot', x, params["w3"][:, :, 0]) \
              + params["b3"][None, :, None]
    return y + res


if __name__ == "__main__":
    # Module config: TCN_ResidualBlock2(num_filters=16, kernel_size=3,
    #   dilation_base=2, dropout_fn=Identity, weight_norm=False,
    #   nr_blocks_below=2, num_layers=3, input_size=8, target_size=4)
    # => input_dim=16, output_dim=4, dilation=4, conv3 present, no relu after conv2.
    num_filters, kernel_size, dilation_base = 16, 3, 2
    nr_blocks_below, num_layers = 2, 3
    input_size, target_size = 8, 4
    input_dim = input_size if nr_blocks_below == 0 else num_filters
    output_dim = target_size if nr_blocks_below == num_layers - 1 else num_filters

    B, T = 2, 16
    key = jax.random.PRNGKey(0)
    ks = jax.random.split(key, 8)
    params = {
        "w1": 0.1 * jax.random.normal(ks[0], (num_filters, input_dim, kernel_size), jnp.float32),
        "b1": 0.1 * jax.random.normal(ks[1], (num_filters,), jnp.float32),
        "w2": 0.1 * jax.random.normal(ks[2], (output_dim, num_filters, kernel_size), jnp.float32),
        "b2": 0.1 * jax.random.normal(ks[3], (output_dim,), jnp.float32),
    }
    if input_dim != output_dim:
        params["w3"] = 0.1 * jax.random.normal(ks[4], (output_dim, input_dim, 1), jnp.float32)
        params["b3"] = 0.1 * jax.random.normal(ks[5], (output_dim,), jnp.float32)

    x = jax.random.normal(ks[6], (B, input_dim, T), jnp.float32)

    out = tcn_residual_block2(
        x, params, kernel_size=kernel_size, dilation_base=dilation_base,
        nr_blocks_below=nr_blocks_below, num_layers=num_layers)
    out = jax.block_until_ready(out)

    expected = ref_forward(
        x, params, kernel_size=kernel_size, dilation_base=dilation_base,
        nr_blocks_below=nr_blocks_below, num_layers=num_layers)

    assert out.shape == (B, output_dim, T), out.shape
    # bf16 MXU operands (f32 accumulation) vs. f32 reference -> loosened tolerance.
    max_err = float(jnp.max(jnp.abs(out - expected)))
    assert jnp.allclose(out, expected, atol=3e-2, rtol=3e-2), max_err
    print("KERNEL_OK")
</pallas_src>

<mosaic_0001>
module attributes {stable_mosaic.version = 11 : i64} {
  func.func @_tcn_block_kernel(%arg0: i32, %arg1: memref<16x128xf32, #tpu.memory_space<vmem>>, %arg2: memref<3x16x16xbf16, #tpu.memory_space<vmem>>, %arg3: memref<16x1xf32, #tpu.memory_space<vmem>>, %arg4: memref<3x4x16xbf16, #tpu.memory_space<vmem>>, %arg5: memref<4x1xf32, #tpu.memory_space<vmem>>, %arg6: memref<4x16xbf16, #tpu.memory_space<vmem>>, %arg7: memref<4x1xf32, #tpu.memory_space<vmem>>, %arg8: memref<4x128xf32, #tpu.memory_space<vmem>>) attributes {dimension_semantics = [#tpu.dimension_semantics<parallel>], iteration_bounds = array<i64: 1>, scalar_prefetch = 0 : i64, scratch_operands = 0 : i64, tpu.core_type = #tpu.core_type<tc>, window_params = [{transform_indices = @transform_0, window_bounds = array<i64: 16, 128>}, {pipeline_mode = #tpu.pipeline_mode<synchronous>, transform_indices = @transform_1, window_bounds = array<i64: 3, 16, 16>}, {pipeline_mode = #tpu.pipeline_mode<synchronous>, transform_indices = @transform_2, window_bounds = array<i64: 16, 1>}, {pipeline_mode = #tpu.pipeline_mode<synchronous>, transform_indices = @transform_3, window_bounds = array<i64: 3, 4, 16>}, {pipeline_mode = #tpu.pipeline_mode<synchronous>, transform_indices = @transform_4, window_bounds = array<i64: 4, 1>}, {pipeline_mode = #tpu.pipeline_mode<synchronous>, transform_indices = @transform_5, window_bounds = array<i64: 4, 16>}, {pipeline_mode = #tpu.pipeline_mode<synchronous>, transform_indices = @transform_6, window_bounds = array<i64: 4, 1>}, {transform_indices = @transform_7, window_bounds = array<i64: 4, 128>}]} {
    %c0 = arith.constant 0 : index
    %c0_0 = arith.constant 0 : index
    %0 = vector.load %arg1[%c0, %c0_0] : memref<16x128xf32, #tpu.memory_space<vmem>>, vector<16x128xf32>
    %1 = tpu.iota {dimensions = array<i32: 1>} : vector<1x128xi32>
    %c15_i32 = arith.constant 15 : i32
    %2 = vector.broadcast %c15_i32 : i32 to vector<1x128xi32>
    %3 = arith.andi %1, %2 : vector<1x128xi32>
    %cst = arith.constant 0.000000e+00 : f32
    %4 = vector.broadcast %cst : f32 to vector<16x128xf32>
    %c8_i32 = arith.constant 8 : i32
    %5 = tpu.dynamic_rotate %0 by %c8_i32 dim 1 : vector<16x128xf32>, i32 -> vector<16x128xf32>
    %c8_i32_1 = arith.constant 8 : i32
    %6 = vector.broadcast %c8_i32_1 : i32 to vector<1x128xi32>
    %7 = arith.cmpi sge, %3, %6 : vector<1x128xi32>
    %cst_2 = arith.constant 0.000000e+00 : f32
    %8 = vector.shape_cast %7 : vector<1x128xi1> to vector<1x128xi1>
    %9 = vector.broadcast %8 : vector<1x128xi1> to vector<16x128xi1>
    %10 = vector.broadcast %cst_2 : f32 to vector<16x128xf32>
    %11 = arith.select %9, %5, %10 : vector<16x128xi1>, vector<16x128xf32>
    %c0_3 = arith.constant 0 : index
    %c0_4 = arith.constant 0 : index
    %c0_5 = arith.constant 0 : index
    %12 = vector.load %arg2[%c0_3, %c0_4, %c0_5] : memref<3x16x16xbf16, #tpu.memory_space<vmem>>, vector<1x16x16xbf16>
    %13 = vector.shape_cast %12 : vector<1x16x16xbf16> to vector<16x16xbf16>
    %14 = arith.truncf %11 : vector<16x128xf32> to vector<16x128xbf16>
    %cst_6 = arith.constant dense<0.000000e+00> : vector<16x128xf32>
    %15 = tpu.matmul %13, %14, %cst_6 {dimension_numbers = #tpu.dot_dimension_numbers<[1], [0], [0], [1], [0, 0, 1, 1], [], []>} : vector<16x16xbf16>, vector<16x128xbf16>, vector<16x128xf32> -> vector<16x128xf32>
    %16 = arith.addf %4, %15 : vector<16x128xf32>
    %c4_i32 = arith.constant 4 : i32
    %17 = tpu.dynamic_rotate %0 by %c4_i32 dim 1 : vector<16x128xf32>, i32 -> vector<16x128xf32>
    %c4_i32_7 = arith.constant 4 : i32
    %18 = vector.broadcast %c4_i32_7 : i32 to vector<1x128xi32>
    %19 = arith.cmpi sge, %3, %18 : vector<1x128xi32>
    %cst_8 = arith.constant 0.000000e+00 : f32
    %20 = vector.shape_cast %19 : vector<1x128xi1> to vector<1x128xi1>
    %21 = vector.broadcast %20 : vector<1x128xi1> to vector<16x128xi1>
    %22 = vector.broadcast %cst_8 : f32 to vector<16x128xf32>
    %23 = arith.select %21, %17, %22 : vector<16x128xi1>, vector<16x128xf32>
    %c1 = arith.constant 1 : index
    %c0_9 = arith.constant 0 : index
    %c0_10 = arith.constant 0 : index
    %24 = vector.load %arg2[%c1, %c0_9, %c0_10] : memref<3x16x16xbf16, #tpu.memory_space<vmem>>, vector<1x16x16xbf16>
    %25 = vector.shape_cast %24 : vector<1x16x16xbf16> to vector<16x16xbf16>
    %26 = arith.truncf %23 : vector<16x128xf32> to vector<16x128xbf16>
    %cst_11 = arith.constant dense<0.000000e+00> : vector<16x128xf32>
    %27 = tpu.matmul %25, %26, %cst_11 {dimension_numbers = #tpu.dot_dimension_numbers<[1], [0], [0], [1], [0, 0, 1, 1], [], []>} : vector<16x16xbf16>, vector<16x128xbf16>, vector<16x128xf32> -> vector<16x128xf32>
    %28 = arith.addf %16, %27 : vector<16x128xf32>
    %c2 = arith.constant 2 : index
    %c0_12 = arith.constant 0 : index
    %c0_13 = arith.constant 0 : index
    %29 = vector.load %arg2[%c2, %c0_12, %c0_13] : memref<3x16x16xbf16, #tpu.memory_space<vmem>>, vector<1x16x16xbf16>
    %30 = vector.shape_cast %29 : vector<1x16x16xbf16> to vector<16x16xbf16>
    %31 = arith.truncf %0 : vector<16x128xf32> to vector<16x128xbf16>
    %cst_14 = arith.constant dense<0.000000e+00> : vector<16x128xf32>
    %32 = tpu.matmul %30, %31, %cst_14 {dimension_numbers = #tpu.dot_dimension_numbers<[1], [0], [0], [1], [0, 0, 1, 1], [], []>} : vector<16x16xbf16>, vector<16x128xbf16>, vector<16x128xf32> -> vector<16x128xf32>
    %33 = arith.addf %28, %32 : vector<16x128xf32>
    %c0_15 = arith.constant 0 : index
    %c0_16 = arith.constant 0 : index
    %34 = vector.load %arg3[%c0_15, %c0_16] : memref<16x1xf32, #tpu.memory_space<vmem>>, vector<16x1xf32>
    %35 = vector.broadcast %34 : vector<16x1xf32> to vector<16x128xf32>
    %36 = arith.addf %33, %35 : vector<16x128xf32>
    %cst_17 = arith.constant 0.000000e+00 : f32
    %37 = vector.broadcast %cst_17 : f32 to vector<16x128xf32>
    %38 = arith.maximumf %36, %37 : vector<16x128xf32>
    %cst_18 = arith.constant 0.000000e+00 : f32
    %39 = vector.broadcast %cst_18 : f32 to vector<4x128xf32>
    %c8_i32_19 = arith.constant 8 : i32
    %40 = tpu.dynamic_rotate %38 by %c8_i32_19 dim 1 : vector<16x128xf32>, i32 -> vector<16x128xf32>
    %c8_i32_20 = arith.constant 8 : i32
    %41 = vector.broadcast %c8_i32_20 : i32 to vector<1x128xi32>
    %42 = arith.cmpi sge, %3, %41 : vector<1x128xi32>
    %cst_21 = arith.constant 0.000000e+00 : f32
    %43 = vector.shape_cast %42 : vector<1x128xi1> to vector<1x128xi1>
    %44 = vector.broadcast %43 : vector<1x128xi1> to vector<16x128xi1>
    %45 = vector.broadcast %cst_21 : f32 to vector<16x128xf32>
    %46 = arith.select %44, %40, %45 : vector<16x128xi1>, vector<16x128xf32>
    %c0_22 = arith.constant 0 : index
    %c0_23 = arith.constant 0 : index
    %c0_24 = arith.constant 0 : index
    %47 = vector.load %arg4[%c0_22, %c0_23, %c0_24] : memref<3x4x16xbf16, #tpu.memory_space<vmem>>, vector<1x4x16xbf16>
    %48 = vector.shape_cast %47 : vector<1x4x16xbf16> to vector<4x16xbf16>
    %49 = arith.truncf %46 : vector<16x128xf32> to vector<16x128xbf16>
    %cst_25 = arith.constant dense<0.000000e+00> : vector<4x128xf32>
    %50 = tpu.matmul %48, %49, %cst_25 {dimension_numbers = #tpu.dot_dimension_numbers<[1], [0], [0], [1], [0, 0, 1, 1], [], []>} : vector<4x16xbf16>, vector<16x128xbf16>, vector<4x128xf32> -> vector<4x128xf32>
    %51 = arith.addf %39, %50 : vector<4x128xf32>
    %c4_i32_26 = arith.constant 4 : i32
    %52 = tpu.dynamic_rotate %38 by %c4_i32_26 dim 1 : vector<16x128xf32>, i32 -> vector<16x128xf32>
    %c4_i32_27 = arith.constant 4 : i32
    %53 = vector.broadcast %c4_i32_27 : i32 to vector<1x128xi32>
    %54 = arith.cmpi sge, %3, %53 : vector<1x128xi32>
    %cst_28 = arith.constant 0.000000e+00 : f32
    %55 = vector.shape_cast %54 : vector<1x128xi1> to vector<1x128xi1>
    %56 = vector.broadcast %55 : vector<1x128xi1> to vector<16x128xi1>
    %57 = vector.broadcast %cst_28 : f32 to vector<16x128xf32>
    %58 = arith.select %56, %52, %57 : vector<16x128xi1>, vector<16x128xf32>
    %c1_29 = arith.constant 1 : index
    %c0_30 = arith.constant 0 : index
    %c0_31 = arith.constant 0 : index
    %59 = vector.load %arg4[%c1_29, %c0_30, %c0_31] : memref<3x4x16xbf16, #tpu.memory_space<vmem>>, vector<1x4x16xbf16>
    %60 = vector.shape_cast %59 : vector<1x4x16xbf16> to vector<4x16xbf16>
    %61 = arith.truncf %58 : vector<16x128xf32> to vector<16x128xbf16>
    %cst_32 = arith.constant dense<0.000000e+00> : vector<4x128xf32>
    %62 = tpu.matmul %60, %61, %cst_32 {dimension_numbers = #tpu.dot_dimension_numbers<[1], [0], [0], [1], [0, 0, 1, 1], [], []>} : vector<4x16xbf16>, vector<16x128xbf16>, vector<4x128xf32> -> vector<4x128xf32>
    %63 = arith.addf %51, %62 : vector<4x128xf32>
    %c2_33 = arith.constant 2 : index
    %c0_34 = arith.constant 0 : index
    %c0_35 = arith.constant 0 : index
    %64 = vector.load %arg4[%c2_33, %c0_34, %c0_35] : memref<3x4x16xbf16, #tpu.memory_space<vmem>>, vector<1x4x16xbf16>
    %65 = vector.shape_cast %64 : vector<1x4x16xbf16> to vector<4x16xbf16>
    %66 = arith.truncf %38 : vector<16x128xf32> to vector<16x128xbf16>
    %cst_36 = arith.constant dense<0.000000e+00> : vector<4x128xf32>
    %67 = tpu.matmul %65, %66, %cst_36 {dimension_numbers = #tpu.dot_dimension_numbers<[1], [0], [0], [1], [0, 0, 1, 1], [], []>} : vector<4x16xbf16>, vector<16x128xbf16>, vector<4x128xf32> -> vector<4x128xf32>
    %68 = arith.addf %63, %67 : vector<4x128xf32>
    %c0_37 = arith.constant 0 : index
    %c0_38 = arith.constant 0 : index
    %69 = vector.load %arg5[%c0_37, %c0_38] : memref<4x1xf32, #tpu.memory_space<vmem>>, vector<4x1xf32>
    %70 = vector.broadcast %69 : vector<4x1xf32> to vector<4x128xf32>
    %71 = arith.addf %68, %70 : vector<4x128xf32>
    %c0_39 = arith.constant 0 : index
    %c0_40 = arith.constant 0 : index
    %72 = vector.load %arg6[%c0_39, %c0_40] : memref<4x16xbf16, #tpu.memory_space<vmem>>, vector<4x16xbf16>
    %73 = arith.truncf %0 : vector<16x128xf32> to vector<16x128xbf16>
    %cst_41 = arith.constant dense<0.000000e+00> : vector<4x128xf32>
    %74 = tpu.matmul %72, %73, %cst_41 {dimension_numbers = #tpu.dot_dimension_numbers<[1], [0], [0], [1], [0, 0, 1, 1], [], []>} : vector<4x16xbf16>, vector<16x128xbf16>, vector<4x128xf32> -> vector<4x128xf32>
    %c0_42 = arith.constant 0 : index
    %c0_43 = arith.constant 0 : index
    %75 = vector.load %arg7[%c0_42, %c0_43] : memref<4x1xf32, #tpu.memory_space<vmem>>, vector<4x1xf32>
    %76 = vector.broadcast %75 : vector<4x1xf32> to vector<4x128xf32>
    %77 = arith.addf %74, %76 : vector<4x128xf32>
    %78 = arith.addf %71, %77 : vector<4x128xf32>
    %c0_44 = arith.constant 0 : index
    %c0_45 = arith.constant 0 : index
    %79 = vector.load %arg8[%c0_44, %c0_45] : memref<4x128xf32, #tpu.memory_space<vmem>>, vector<4x128xf32>
    tpu.vector_store %arg8[%c0_44, %c0_45], %78 {strides = array<i32>} : memref<4x128xf32, #tpu.memory_space<vmem>>, vector<4x128xf32>,
    return
  }
  func.func @transform_0(%arg0: i32) -> (i32, i32) {
    %c0_i32 = arith.constant 0 : i32
    %c0_i32_0 = arith.constant 0 : i32
    return %c0_i32, %arg0 : i32, i32
  }
  func.func @transform_1(%arg0: i32) -> (i32, i32, i32) {
    %c0_i32 = arith.constant 0 : i32
    %c0_i32_0 = arith.constant 0 : i32
    %c0_i32_1 = arith.constant 0 : i32
    %c0_i32_2 = arith.constant 0 : i32
    return %c0_i32, %c0_i32_0, %c0_i32_1 : i32, i32, i32
  }
  func.func @transform_2(%arg0: i32) -> (i32, i32) {
    %c0_i32 = arith.constant 0 : i32
    %c0_i32_0 = arith.constant 0 : i32
    %c0_i32_1 = arith.constant 0 : i32
    return %c0_i32, %c0_i32_0 : i32, i32
  }
  func.func @transform_3(%arg0: i32) -> (i32, i32, i32) {
    %c0_i32 = arith.constant 0 : i32
    %c0_i32_0 = arith.constant 0 : i32
    %c0_i32_1 = arith.constant 0 : i32
    %c0_i32_2 = arith.constant 0 : i32
    return %c0_i32, %c0_i32_0, %c0_i32_1 : i32, i32, i32
  }
  func.func @transform_4(%arg0: i32) -> (i32, i32) {
    %c0_i32 = arith.constant 0 : i32
    %c0_i32_0 = arith.constant 0 : i32
    %c0_i32_1 = arith.constant 0 : i32
    return %c0_i32, %c0_i32_0 : i32, i32
  }
  func.func @transform_5(%arg0: i32) -> (i32, i32) {
    %c0_i32 = arith.constant 0 : i32
    %c0_i32_0 = arith.constant 0 : i32
    %c0_i32_1 = arith.constant 0 : i32
    return %c0_i32, %c0_i32_0 : i32, i32
  }
  func.func @transform_6(%arg0: i32) -> (i32, i32) {
    %c0_i32 = arith.constant 0 : i32
    %c0_i32_0 = arith.constant 0 : i32
    %c0_i32_1 = arith.constant 0 : i32
    return %c0_i32, %c0_i32_0 : i32, i32
  }
  func.func @transform_7(%arg0: i32) -> (i32, i32) {
    %c0_i32 = arith.constant 0 : i32
    %c0_i32_0 = arith.constant 0 : i32
    return %c0_i32, %arg0 : i32, i32
  }
}

</mosaic_0001>

<bundles_post_ra>
// kernel: tpu_custom_call.1
= control target key start
LH: loop header
LB: loop body
LE: loop exit
PB: predicated region body
PF: predicated region fallthrough
CT: control target
= control target key end

     0   :  { %12 = vsyncpa [#allocation3], 0  ;;  %s821_s0 = inlined_call_operand.hbm [shape: f32[16,128], index: 0, kind: input, shape index: {}]   ;;  %s822_s1 = inlined_call_operand.vmem [shape: bf16[3,16,16], index: 1, kind: input, shape index: {}]   ;;  %s823_s2 = inlined_call_operand.vmem [shape: f32[16,1], index: 2, kind: input, shape index: {}]   ;;  %s824_s3 = inlined_call_operand.vmem [shape: bf16[3,4,16], index: 3, kind: input, shape index: {}]   ;;  %s825_s4 = inlined_call_operand.vmem [shape: f32[4,1], index: 4, kind: input, shape index: {}]   ;;  %s826_s5 = inlined_call_operand.vmem [shape: bf16[4,16], index: 5, kind: input, shape index: {}]   ;;  %s827_s6 = inlined_call_operand.vmem [shape: f32[4,1], index: 6, kind: input, shape index: {}]   ;;  %s828_s7 = inlined_call_operand.hbm [shape: f32[4,128], index: 7, kind: output, shape index: {}]  }
   0x1   :  { %13 = vsyncpa [#allocation4], 0  ;;  %s645_s24 = smov [#allocation2]   ;;  %s597_s28 = scalar_lea.hbm %s821_s0, 256 }
   0x2   :  { %s19_s25 = sshll.u32 %s645_s24, 4  ;;  %p598_p0 = scmp.ne.s32.totalorder %s821_s0, %s597_s28  ;;  %s20_s25 = int_to_ptr.vmem [resolvable:$true] %s19_s25 }
   0x3   :  { %p601_p1 = scmp.lt.u32.totalorder %s597_s28, %s821_s0 }
   0x5   :  { %p603_p2 = pnand %p601_p1, %p598_p0 }
   0x7   :  { %606 = shalt.err (!%p603_p2)
}
   0x8   :  { %s607_s10 = scalar_lea.vmem %s20_s25, 256  ;;  %p612_p4 = scmp.lt.s32.totalorder %s20_s25, %s20_s25 }
   0x9   :  { %p608_p3 = scmp.ne.s32.totalorder %s20_s25, %s607_s10  ;;  %p613_p5 = scmp.lt.s32.totalorder %s607_s10, %s607_s10 }
   0xb   :  { %p614_p6 = por %p613_p5, %p612_p4 }
   0xd   :  { %p615_p7 = pnand %p614_p6, %p608_p3 }
   0xf   :  { %618 = shalt.err (!%p615_p7)
}
  0x10   :  { %s646_s11 = smov 128   ;;  %s647_s12 = smov 8  }
  0x11   :  { %25 = dma.hbm_to_vmem [thread:$0]  %s821_s0, 256, %s20_s25, [#allocation3], %s646_s11, %s646_s11, %s647_s12  }
  0x12   :  { %641 = dma.done.wait [#allocation3], 256  }
  0x13   :  { %642 = vsyncadd [#allocation3], 4294967040  ;;  %v648_v0 = vmov 0.0   ;;  %vm649_vm0 = vmmov 0   ;;  %v42_v1 = vld [vmem:[#allocation2] sm:$0xff]  ;;  %v43_v2 = vld [vmem:[#allocation2 + $0x8] sm:$0xff]  ;;  %v44_v8 = vlaneseq }
  0x14   :  { %508 = vmatprep.subr.bf16.mxu0 %v648_v0  ;;  %526 = vmatprep.subr.bf16.mxu1 %v648_v0  ;;  %v572_v3 = vpack.i.bf16 %v43_v2, %v42_v1  ;;  %v712_v4 = vpack.c.bf16 %v43_v2, %v42_v1  ;;  %s650_s0 = smov 4   ;;  %v226_v5 = vld [vmem:[%s823_s2] sm:$0xff]  ;;  %v651_v6 = vmov 0   ;;  %v227_v7 = vld [vmem:[%s823_s2 + $0x8] sm:$0xff]  ;;  %vm77_vm4 = vcmask 130048   ;;  %v596_v23 = vld [vmem:[%s822_s1 + $0x10] sm:$0xff]  }
  0x15   :  { %510 = vmatprep.mubr.msk.bf16.mxu0 %vm649_vm0, %v648_v0  ;;  %528 = vmatprep.mubr.msk.bf16.mxu1 %vm649_vm0, %v648_v0  ;;  %v45_v9 = vand.u32 127, %v44_v8  ;;  %v594_v18 = vld [vmem:[%s822_s1 + $0x8] sm:$0xff]   ;;  %v595_v22 = vld [vmem:[%s822_s1] sm:$0xff]   ;;  %s652_s10 = smov [#allocation5]  }
  0x16   :  { %573 = vrot.lane.b32.xlu0 %v572_v3, %s650_s0  ;;  %582 = vset.pattern.permute.xlu1 %v651_v6  ;;  %v400_v48 = vld [vmem:[%s827_s6] sm:$0xf]  ;;  %v491_v60 = vld [vmem:[%s824_s3 + $0x4] sm:$0x3]  ;;  %s457_s11 = sshll.u32 %s652_s10, 4  ;;  %s458_s11 = int_to_ptr.vmem [resolvable:$true] %s457_s11 }
  0x17   :  { %593 = vset.pattern.permute.xlu0 %v651_v6  ;;  %230 = vperm.xlu1 %582, %v226_v5   ;;  %v46_v10 = vand.u32 15, %v45_v9  ;;  %v392_v49 = vld [vmem:[%s825_s4] sm:$0xf]  ;;  %p624_p9 = scmp.lt.s32.totalorder %s458_s11, %s458_s11 }
  0x18   :  { %v482_v57 = vld [vmem:[%s824_s3 + $0x2] sm:$0x3]  ;;  %v248_v59 = vld [vmem:[%s824_s3] sm:$0x3]  ;;  %s619_s3 = scalar_lea.vmem %s458_s11, 64 }
  0x19   :  { %vm722_vm1 = vcmp.ge.s32.totalorder %v46_v10, 4  ;;  %vm729_vm3 = vcmp.ge.s32.totalorder %v46_v10, 8  ;;  %v399_v61 = vld [vmem:[%s826_s5] sm:$0x3]  ;;  %p620_p8 = scmp.ne.s32.totalorder %s458_s11, %s619_s3  ;;  %p625_p10 = scmp.lt.s32.totalorder %s619_s3, %s619_s3 }
  0x1a   :  { %578 = vrot.lane.b32.xlu0 %v572_v3, %s647_s12  ;;  %vm469_vm2 = vmpackc.low %vm722_vm1, %vm722_vm1 }
  0x1b   :  { %235 = vperm.xlu1 %582, %v227_v7   ;;  %vm474_vm5 = vmpackc.low %vm729_vm3, %vm729_vm3  ;;  %p626_p11 = por %p625_p10, %p624_p9 }
  0x1d   :  { %p627_p12 = pnand %p626_p11, %p620_p8 }
  0x88   :  { %v574_v12 = vpop.permute.xlu0 %573 }
  0x89   :  { %v576_v13 = vunpack.i.h.bf16 %v574_v12  ;;  %v575_v14 = vunpack.i.l.bf16 %v574_v12 }
  0x8b   :  { %v470_v15 = vpack.c.bf16 %v576_v13, %v575_v14 }
  0x8c   :  { %v579_v17 = vpop.permute.xlu0 %578 }
  0x8d   :  { %v581_v19 = vunpack.i.h.bf16 %v579_v17  ;;  %v580_v20 = vunpack.i.l.bf16 %v579_v17  ;;  %509 = vmatpush3.bf16.msk.msra.mxu0 %vm469_vm2, %v470_v15 }
  0x8e   :  { %514 = vmatprep.subr.bf16.mxu0 %v648_v0 }
  0x8f   :  { %v475_v21 = vpack.c.bf16 %v581_v19, %v580_v20 }
  0x90   :  { %511 = vmatmul.mubr.msk.bf16.vlgmr.msra.gmra.mrb[0].mxu0 %vm77_vm4, %v594_v18 }
  0x91   :  { %515 = vmatpush3.bf16.msk.msra.mxu0 %vm474_vm5, %v475_v21  ;;  %516 = vmatprep.mubr.msk.bf16.mxu0 %vm649_vm0, %v648_v0 }
  0x92   :  { %520 = vmatprep.subr.bf16.mxu0 %v648_v0 }
  0x96   :  { %v231_v34 = vpop.permute.xlu1 %230 }
  0x98   :  { %517 = vmatmul.mubr.msk.bf16.vlgmr.msra.gmra.mrb[4].mxu0 %vm77_vm4, %v595_v22 }
  0x99   :  { %521 = vmatpush3.bf16.msra.mxu0 %v712_v4  ;;  %522 = vmatprep.mubr.msk.bf16.mxu0 %vm649_vm0, %v648_v0 }
  0x9a   :  { %v236_v42 = vpop.permute.xlu1 %235 }
  0xa0   :  { %523 = vmatmul.mubr.msk.bf16.vlgmr.msra.gmra.mrb[8].mxu0 %vm77_vm4, %v596_v23 }
 0x163   :  { %v115_v24 = vpop.f32.mrb[0].mxu0 }
 0x164   :  { %v512_v25 = vpop.f32.mrb[1].mxu0 }
 0x165   :  { %v118_v26 = vpop.f32.mrb[2].mxu0 }
 0x166   :  { %v513_v27 = vpop.f32.mrb[3].mxu0 }
 0x16b   :  { %v164_v28 = vpop.f32.mrb[4].mxu0 }
 0x16c   :  { %v165_v29 = vadd.f32 %v164_v28, %v115_v24  ;;  %v518_v30 = vpop.f32.mrb[5].mxu0 }
 0x16d   :  { %v167_v31 = vpop.f32.mrb[6].mxu0 }
 0x16e   :  { %v168_v32 = vadd.f32 %v167_v31, %v118_v26  ;;  %v519_v33 = vpop.f32.mrb[7].mxu0 }
 0x173   :  { %v217_v35 = vpop.f32.mrb[8].mxu0 }
 0x174   :  { %v224_v36 = vadd.f32 %v217_v35, %v165_v29  ;;  %v524_v37 = vpop.f32.mrb[9].mxu0 }
 0x175   :  { %v220_v38 = vpop.f32.mrb[10].mxu0 }
 0x176   :  { %v238_v39 = vadd.f32 %v231_v34, %v224_v36  ;;  %v225_v40 = vadd.f32 %v220_v38, %v168_v32  ;;  %v525_v41 = vpop.f32.mrb[11].mxu0 }
 0x178   :  { %v239_v43 = vadd.f32 %v236_v42, %v225_v40  ;;  %v240_v44 = vmax.f32 %v238_v39, 0.0 }
 0x17a   :  { %v241_v45 = vmax.f32 %v239_v43, 0.0 }
 0x17c   :  { %v588_v46 = vpack.i.bf16 %v241_v45, %v240_v44  ;;  %v347_v47 = vpack.c.bf16 %v241_v45, %v240_v44 }
 0x17e   :  { %589 = vrot.lane.b32.xlu1 %v588_v46, %s647_s12  ;;  %584 = vrot.lane.b32.xlu0 %v588_v46, %s650_s0 }
 0x182   :  { %403 = vperm.xlu1 %582, %v400_v48   ;;  %395 = vperm.xlu0 %593, %v392_v49  }
 0x1f0   :  { %v590_v50 = vpop.permute.xlu1 %589  ;;  %v585_v51 = vpop.permute.xlu0 %584 }
 0x1f1   :  { %v587_v52 = vunpack.i.h.bf16 %v585_v51  ;;  %v586_v53 = vunpack.i.l.bf16 %v585_v51  ;;  %v592_v54 = vunpack.i.h.bf16 %v590_v50  ;;  %v591_v55 = vunpack.i.l.bf16 %v590_v50 }
 0x1f3   :  { %v484_v56 = vpack.c.bf16 %v587_v52, %v586_v53  ;;  %v488_v58 = vpack.c.bf16 %v592_v54, %v591_v55 }
 0x1f5   :  { %527 = vmatpush3.bf16.msk.msra.mxu1 %vm469_vm2, %v484_v56 }
 0x1f6   :  { %532 = vmatprep.subr.bf16.mxu1 %v648_v0 }
 0x1f8   :  { %529 = vmatmul.mubr.msk.bf16.vlgmr.msra.gmra.mrb[0].mxu1 %vm77_vm4, %v482_v57 }
 0x1f9   :  { %533 = vmatpush3.bf16.msk.msra.mxu1 %vm474_vm5, %v488_v58  ;;  %534 = vmatprep.mubr.msk.bf16.mxu1 %vm649_vm0, %v648_v0 }
 0x1fa   :  { %538 = vmatprep.subr.bf16.mxu1 %v648_v0 }
 0x201   :  { %v404_v62 = vpop.permute.xlu1 %403  ;;  %v396_v63 = vpop.permute.xlu0 %395 }
 0x202   :  { %v550_v1 = vadd.f32 %v404_v62, %v396_v63 }
 0x204   :  { %535 = vmatmul.mubr.msk.bf16.vlgmr.msra.gmra.mrb[0].mxu1 %vm77_vm4, %v248_v59 }
 0x205   :  { %539 = vmatpush3.bf16.msra.mxu1 %v347_v47  ;;  %540 = vmatprep.mubr.msk.bf16.mxu1 %vm649_vm0, %v648_v0 }
 0x206   :  { %544 = vmatprep.subr.bf16.mxu1 %v648_v0 }
 0x210   :  { %541 = vmatmul.mubr.msk.bf16.vlgmr.msra.gmra.mrb[0].mxu1 %vm77_vm4, %v491_v60 }
 0x211   :  { %545 = vmatpush3.bf16.msra.mxu1 %v712_v4  ;;  %546 = vmatprep.mubr.msk.bf16.mxu1 %vm649_vm0, %v648_v0 }
 0x21c   :  { %547 = vmatmul.mubr.msk.bf16.vlgmr.msra.gmra.mrb[0].mxu1 %vm77_vm4, %v399_v61 }
 0x2ef   :  { %v443_v2 = vpop.f32.mrb[0].mxu1 }
 0x2f0   :  { %v551_v3 = vadd.f32 %v550_v1, %v443_v2  ;;  %v548_v5 = vpop.f32.mrb[1].mxu1 }
 0x2f1   :  { %v446_v6 = vpop.f32.mrb[2].mxu1 }
 0x2f2   :  { %450 = vst [vmem:[#allocation5] sm:$0xf] %v551_v3  ;;  %v549_v4 = vpop.f32.mrb[3].mxu1 }
 0x2f3   :  { %630 = shalt.err (!%p627_p12)
}
 0x2f4   :  { %s631_s13 = scalar_lea.hbm %s828_s7, 64 }
 0x2f5   :  { %p632_p13 = scmp.ne.s32.totalorder %s828_s7, %s631_s13  ;;  %p635_p0 = scmp.lt.u32.totalorder %s631_s13, %s828_s7 }
 0x2f7   :  { %p637_p1 = pnand %p635_p0, %p632_p13 }
 0x2f9   :  { %640 = shalt.err (!%p637_p1)
}
 0x2fa   :  { %460 = dma.vmem_to_hbm [thread:$0]  %s458_s11, 64, %s828_s7, [#allocation4]  }
 0x2fb   :  { %643 = dma.done.wait [#allocation4], 64  }
 0x2fc   :  { %644 = vsyncadd [#allocation4], 4294967232 }
 0x2fd   :  { %464 = vsyncpa [#allocation3], 1 }
 0x2fe   :  { %465 = vsyncpa [#allocation4], 1 }

</bundles_post_ra>
